<compile_context>
chip_gen: v7x
topology: tpu7x:2x2x1
jax: 0.10.0
libtpu: 0.0.40
codegen_flags: <defaults>
</compile_context>

<pallas_src>
import functools

import jax
import jax.numpy as jnp
from jax.experimental import pallas as pl
from jax.experimental.pallas import tpu as pltpu


# ---------------------------------------------------------------------------
# Kernel bodies
# ---------------------------------------------------------------------------

def _doc_mean(x_ref, *, chunks, max_rows=8):
    """Per-doc mean of a (docs, chunks, d_in) x tile, accumulated in f32.

    Sub-blocks of <= max_rows chunk rows are cast and summed at a time, so narrow
    input dtypes never materialize a full-width f32 copy of the whole slab.
    """
    docs, _, d_in = x_ref.shape
    acc = jnp.zeros((docs, d_in), jnp.float32)
    c0 = 0
    while c0 < chunks:
        cs = min(max_rows, chunks - c0)
        blk = x_ref[:, c0:c0 + cs, :].astype(jnp.float32)   # static slice, small f32 temp
        acc = acc + jnp.sum(blk, axis=1)
        c0 += cs
    return acc * jnp.float32(1.0 / chunks)


def _project(xm, w_ref, o_ref):
    w = w_ref[...]
    # For sub-32-bit weights feed the MXU in the weight dtype; accumulate in f32 either way.
    lhs = xm.astype(w.dtype) if w.dtype.itemsize < 4 else xm
    o_ref[...] = jnp.dot(lhs, w, preferred_element_type=jnp.float32).astype(o_ref.dtype)


def _eh_kernel_resident(x_ref, w_ref, o_ref, *, chunks):
    # 1-D grid over doc tiles; the full W.T tile is VMEM-resident (constant index map).
    _project(_doc_mean(x_ref, chunks=chunks), w_ref, o_ref)


def _eh_kernel_tiled(x_ref, w_ref, o_ref, xm_ref, *, chunks):
    # 2-D grid (doc tiles x d_out tiles). The per-doc mean is computed once per doc tile
    # (j == 0) and cached in VMEM scratch for the remaining d_out tiles.
    @pl.when(pl.program_id(1) == 0)
    def _():
        xm_ref[...] = _doc_mean(x_ref, chunks=chunks)

    _project(xm_ref[...], w_ref, o_ref)


# ---------------------------------------------------------------------------
# Tiling / budgeting helpers
# ---------------------------------------------------------------------------

def _vmem_capacity_bytes():
    try:
        return int(pltpu.get_tpu_info().vmem_capacity_bytes)
    except Exception:
        return 64 * 1024 * 1024          # conservative (v7x-sized) fallback


def _aligned_divisors(dim, align):
    return [d for d in range(align, dim + 1, align) if dim % d == 0]


def _pick_docs_per_tile(ndocs, fits):
    aligned = _aligned_divisors(ndocs, 8)
    pools = []
    multi = [d for d in aligned if d <= max(8, ndocs // 2)]   # keep >=2 doc tiles (v7x megacore)
    if multi:
        pools.append(multi)
    if aligned:
        pools.append(aligned)
    pools.append([ndocs])                 # last resort: one full-extent doc tile (always legal)
    for pool in pools:
        for d in sorted(set(pool), reverse=True):
            if fits(d):
                return d
    # Nothing satisfies the budget: smallest legal tile; the raised vmem_limit absorbs it.
    # TODO(synk): also tile the chunk axis for extreme chunks*d_in products.
    return aligned[0] if aligned else ndocs


def _pick_tn(d_out, fits):
    cands = _aligned_divisors(d_out, 128)
    for t in sorted(cands, reverse=True):
        if fits(t):
            return t
    return cands[0] if cands else d_out


# ---------------------------------------------------------------------------
# Forward wrapper
# ---------------------------------------------------------------------------

def entropy_hash_forward(x, w_t, ndocs: int, *, docs_per_tile=None, tn=None,
                         vmem_budget_bytes=None, x_buffers=None, out_dtype=None):
    """x: (N, d_in), w_t: (d_in, d_out) = W.T.  Returns (ndocs, d_out)."""
    N, d_in = x.shape
    d_in_w, d_out = w_t.shape
    assert d_in_w == d_in, "weight / input dim mismatch"
    assert N % ndocs == 0, "batch must be divisible by ndocs"
    chunks = N // ndocs
    out_dtype = x.dtype if out_dtype is None else out_dtype

    x_isz = jnp.dtype(x.dtype).itemsize
    w_isz = jnp.dtype(w_t.dtype).itemsize
    o_isz = jnp.dtype(out_dtype).itemsize

    # --- per-generation VMEM budget (~112 MiB usable on v5e/v6e, ~56 MiB on v7x) ---
    cap = _vmem_capacity_bytes()
    vmem_limit = min(int(cap * 7 // 8), 112 * 1024 * 1024)
    budget = (min(int(cap * 3 // 4), 96 * 1024 * 1024)
              if vmem_budget_bytes is None else int(vmem_budget_bytes))

    def tile_bytes(docs, tn_, resident_, nbx_):
        x_buf = nbx_ * docs * chunks * d_in * x_isz           # pipelined x slab
        w_buf = 2 * d_in * tn_ * w_isz                        # (double-buffered) weight tile
        o_buf = 2 * docs * tn_ * o_isz                        # output tile
        xm = 0 if resident_ else docs * d_in * 4              # cached per-doc mean scratch
        tmp = (docs * d_in * 4                                # f32 mean accumulator
               + docs * min(chunks, 8) * d_in * 4             # per-sub-block f32 cast
               + docs * tn_ * 4)                              # f32 matmul result
        return x_buf + w_buf + o_buf + xm + tmp

    nbx = 2 if x_buffers is None else int(x_buffers)
    resident = tn is None and 2 * d_in * d_out * w_isz <= budget // 2

    if resident:
        tn = d_out
        if docs_per_tile is None:
            docs_per_tile = _pick_docs_per_tile(
                ndocs, lambda d: tile_bytes(d, d_out, True, 2) <= budget)
    else:
        if tn is None:
            tn = _pick_tn(d_out, lambda t: 2 * d_in * t * w_isz <= budget // 2)
        if docs_per_tile is None:
            docs_per_tile = _pick_docs_per_tile(
                ndocs, lambda d: tile_bytes(d, tn, False, nbx) <= budget)

    assert ndocs % docs_per_tile == 0
    assert d_out % tn == 0
    n_doc_tiles = ndocs // docs_per_tile

    x3 = x.reshape(ndocs, chunks, d_in)       # free view: rows are already doc-major

    if resident:
        grid = (n_doc_tiles,)
        in_specs = [
            pl.BlockSpec((docs_per_tile, chunks, d_in), lambda i: (i, 0, 0)),
            # Constant block index: the full W.T is DMA'd into VMEM exactly once.
            pl.BlockSpec((d_in, d_out), lambda i: (0, 0)),
        ]
        out_specs = pl.BlockSpec((docs_per_tile, d_out), lambda i: (i, 0))
        scratch = ()
        dims = ("parallel",)
        kernel = functools.partial(_eh_kernel_resident, chunks=chunks)
        w_reads = 1
    else:
        grid = (n_doc_tiles, d_out // tn)
        x_kwargs = {} if x_buffers is None else {"pipeline_mode": pl.Buffered(nbx)}
        in_specs = [
            # x tile is constant along j -> DMA'd once per doc tile; optional deeper
            # buffering (x_buffers>2) lets the next doc tile's slab start earlier.
            pl.BlockSpec((docs_per_tile, chunks, d_in), lambda i, j: (i, 0, 0), **x_kwargs),
            pl.BlockSpec((d_in, tn), lambda i, j: (0, j)),
        ]
        out_specs = pl.BlockSpec((docs_per_tile, tn), lambda i, j: (i, j))
        scratch = (pltpu.VMEM((docs_per_tile, d_in), jnp.float32),)
        dims = ("parallel", "arbitrary")
        kernel = functools.partial(_eh_kernel_tiled, chunks=chunks)
        w_reads = n_doc_tiles

    cost = pl.CostEstimate(
        flops=2 * ndocs * d_in * d_out + N * d_in,
        transcendentals=0,
        bytes_accessed=(N * d_in * x_isz
                        + w_reads * d_in * d_out * w_isz
                        + ndocs * d_out * o_isz),
    )

    return pl.pallas_call(
        kernel,
        out_shape=jax.ShapeDtypeStruct((ndocs, d_out), out_dtype),
        grid_spec=pltpu.PrefetchScalarGridSpec(
            num_scalar_prefetch=0,
            grid=grid,
            in_specs=in_specs,
            out_specs=out_specs,
            scratch_shapes=scratch,
        ),
        compiler_params=pltpu.CompilerParams(
            dimension_semantics=dims,
            vmem_limit_bytes=vmem_limit,
        ),
        cost_estimate=cost,
    )(x3, w_t)


# ---------------------------------------------------------------------------
# Host-side helpers & self-test
# ---------------------------------------------------------------------------

def make_orthogonal_weight(key, out_dim: int, in_dim: int):
    """Mimic nn.init.orthogonal_ for a (out_dim, in_dim) weight (out_dim <= in_dim).
    Returned already transposed as (in_dim, out_dim) so the kernel computes x @ W.T."""
    a = jax.random.normal(key, (in_dim, out_dim), dtype=jnp.float32)
    q, r = jnp.linalg.qr(a)                  # q: (in_dim, out_dim), orthonormal columns
    sign = jnp.sign(jnp.diag(r))
    sign = jnp.where(sign == 0, 1.0, sign)   # guard vanishing diagonal entries
    return (q * sign[None, :]).astype(jnp.float32)


def _run_case(input_dim, output_dim, ndocs, chunks, key, dtype=jnp.float32,
              atol=1e-4, rtol=1e-4, **kwargs):
    kx, kw = jax.random.split(key)
    N = ndocs * chunks
    x = jax.random.normal(kx, (N, input_dim), dtype=jnp.float32)
    w_t = make_orthogonal_weight(kw, output_dim, input_dim)
    x = x.astype(dtype)
    w_t = w_t.astype(dtype)

    out = jax.block_until_ready(entropy_hash_forward(x, w_t, ndocs, **kwargs))

    # Pure-JAX reference (matmul-then-mean, matching the PyTorch module), f32 math.
    xf = x.astype(jnp.float32)
    wf = w_t.astype(jnp.float32)
    ref = (xf @ wf).reshape(ndocs, -1, output_dim).mean(axis=1)
    assert out.shape == (ndocs, output_dim)
    err = jnp.max(jnp.abs(out.astype(jnp.float32) - ref))
    assert jnp.allclose(out.astype(jnp.float32), ref, atol=atol, rtol=rtol), \
        f"mismatch vs reference (max abs err {err})"


if __name__ == "__main__":
    key = jax.random.PRNGKey(0)
    k1, k2, k3 = jax.random.split(key, 3)

    # 1) Scaled-down module defaults -> resident-weight 1-D grid path, f32.
    _run_case(input_dim=256, output_dim=128, ndocs=16, chunks=8, key=k1)

    # 2) Force the 2-D (d_out-tiled) fallback path: exercises the pl.when-cached
    #    per-doc-mean scratch across the "arbitrary" j axis.
    _run_case(input_dim=256, output_dim=256, ndocs=32, chunks=16, key=k2,
              docs_per_tile=8, tn=128)

    # 3) bf16 streaming (halves HBM bytes; kernel still accumulates in f32).
    _run_case(input_dim=256, output_dim=128, ndocs=16, chunks=8, key=k3,
              dtype=jnp.bfloat16, atol=2e-2, rtol=2e-2)

    print("KERNEL_OK")
</pallas_src>

<mosaic_0001>
module attributes {stable_mosaic.version = 11 : i64} {
  func.func @_eh_kernel_resident(%arg0: i32, %arg1: memref<8x8x256xf32, #tpu.memory_space<vmem>>, %arg2: memref<256x128xf32, #tpu.memory_space<vmem>>, %arg3: memref<8x128xf32, #tpu.memory_space<vmem>>) attributes {dimension_semantics = [#tpu.dimension_semantics<parallel>], iteration_bounds = array<i64: 2>, scalar_prefetch = 0 : i64, scratch_operands = 0 : i64, tpu.core_type = #tpu.core_type<tc>, window_params = [{transform_indices = @transform_0, window_bounds = array<i64: 8, 8, 256>}, {pipeline_mode = #tpu.pipeline_mode<synchronous>, transform_indices = @transform_1, window_bounds = array<i64: 256, 128>}, {transform_indices = @transform_2, window_bounds = array<i64: 8, 128>}]} {
    %cst = arith.constant 0.000000e+00 : f32
    %0 = vector.broadcast %cst : f32 to vector<8x256xf32>
    %c0 = arith.constant 0 : index
    %c0_0 = arith.constant 0 : index
    %c0_1 = arith.constant 0 : index
    %1 = vector.load %arg1[%c0, %c0_0, %c0_1] : memref<8x8x256xf32, #tpu.memory_space<vmem>>, vector<8x8x256xf32>
    %cst_2 = arith.constant dense<0.000000e+00> : vector<8x256xf32>
    %2 = vector.multi_reduction <add>, %1, %cst_2 [1] : vector<8x8x256xf32> to vector<8x256xf32>
    %3 = arith.addf %0, %2 : vector<8x256xf32>
    %cst_3 = arith.constant 1.250000e-01 : f32
    %4 = vector.broadcast %cst_3 : f32 to vector<8x256xf32>
    %5 = arith.mulf %3, %4 : vector<8x256xf32>
    %c0_4 = arith.constant 0 : index
    %c0_5 = arith.constant 0 : index
    %6 = vector.load %arg2[%c0_4, %c0_5] : memref<256x128xf32, #tpu.memory_space<vmem>>, vector<256x128xf32>
    %cst_6 = arith.constant dense<0.000000e+00> : vector<8x128xf32>
    %7 = tpu.matmul %5, %6, %cst_6 {dimension_numbers = #tpu.dot_dimension_numbers<[1], [0], [0], [1], [0, 0, 1, 1], [], []>} : vector<8x256xf32>, vector<256x128xf32>, vector<8x128xf32> -> vector<8x128xf32>
    %c0_7 = arith.constant 0 : index
    %c0_8 = arith.constant 0 : index
    %8 = vector.load %arg3[%c0_7, %c0_8] : memref<8x128xf32, #tpu.memory_space<vmem>>, vector<8x128xf32>
    tpu.vector_store %arg3[%c0_7, %c0_8], %7 {strides = array<i32>} : memref<8x128xf32, #tpu.memory_space<vmem>>, vector<8x128xf32>,
    return
  }
  func.func @transform_0(%arg0: i32) -> (i32, i32, i32) {
    %c0_i32 = arith.constant 0 : i32
    %c0_i32_0 = arith.constant 0 : i32
    %c0_i32_1 = arith.constant 0 : i32
    return %arg0, %c0_i32, %c0_i32_0 : i32, i32, i32
  }
  func.func @transform_1(%arg0: i32) -> (i32, i32) {
    %c0_i32 = arith.constant 0 : i32
    %c0_i32_0 = arith.constant 0 : i32
    %c0_i32_1 = arith.constant 0 : i32
    return %c0_i32, %c0_i32_0 : i32, i32
  }
  func.func @transform_2(%arg0: i32) -> (i32, i32) {
    %c0_i32 = arith.constant 0 : i32
    %c0_i32_0 = arith.constant 0 : i32
    return %arg0, %c0_i32 : i32, i32
  }
}

</mosaic_0001>

<bundles_post_ra>
// kernel: tpu_custom_call.1
= control target key start
LH: loop header
LB: loop body
LE: loop exit
PB: predicated region body
PF: predicated region fallthrough
CT: control target
= control target key end

     0   :  { %7 = vsyncpa [#allocation3], 0  ;;  %s1146_s0 = inlined_call_operand.hbm [shape: f32[16,8,256], index: 0, kind: input, shape index: {}]   ;;  %s1147_s1 = inlined_call_operand.hbm [shape: f32[256,128], index: 1, kind: input, shape index: {}]   ;;  %s1148_s2 = inlined_call_operand.hbm [shape: f32[16,128], index: 2, kind: output, shape index: {}]  }
   0x1   :  { %9 = vsyncpa [#allocation3 + $0x1], 0 }
   0x2   :  { %10 = vsyncpa [#allocation6], 0 }
   0x3   :  { %11 = vsyncpa [#allocation4], 0 }
   0x4   :  { %13 = vsyncpa [#allocation4 + $0x1], 0  ;;  %s857_s9 = smov 0   ;;  %s859_s10 = smov 0  }
   0x5   :  { %s861_s11 = smov 0   ;;  %s863_s12 = smov 0  }
   0x6 LB: > { %s878_s13 = sadd.s32 4294967295, %s833_s12   ;;  %s559_s14 = sadd.s32 4294967294, %s833_s12   ;;  %s833_s12 = sphi %s863_s12, %s1168_s12   ;;  %s829_s11 = sphi %s861_s11, %s1167_s11   ;;  %s825_s10 = sphi %s859_s10, %s1166_s10   ;;  %s821_s9 = sphi %s857_s9, %s1165_s9  }
   0x7   : > { %p39_p0 = scmp.ne.s32.totalorder %s825_s10, %s821_s9  ;;  %p1149_p1 = scmp.eq.s32.totalorder %s878_s13, 0 }
   0x8   : > { %p90_p3 = scmp.eq.s32.totalorder %s559_s14, 1  ;;  %p560_p5 = scmp.ge.s32.totalorder %s833_s12, 1 }
   0x9   : > { %p887_p4 = por %p1149_p1, %p39_p0  ;;  %p97_p7 = scmp.lt.s32.totalorder %s833_s12, 3 }
   0xa   : > { %p892_p6 = por %p90_p3, %p39_p0  ;;  %s835_s18 = smov [#allocation5]  }
   0xb   : > { %s1152_s15 = scalar_select %p887_p4, 1, 0 }
   0xc   : > { %s1153_s16 = scalar_select %p892_p6, 1, 0 }
   0xd   : > { %p897_p8 = pnand %p560_p5, %p97_p7  ;;  %s109_s19 = sshll.u32 %s835_s18, 4  ;;  %s901_s19 = int_to_ptr.vmem [resolvable:$true] %s109_s19 }
   0xe   : > { %s913_s21 = sadd.s32 1, %s833_s12   ;;  %s26_s22 = sadd.s32 1, %s829_s11 }
   0xf   : > { %s1154_s17 = scalar_select %p897_p8, 1, 0 }
  0x10   : > { %p652_p9 = pneg %p897_p8  ;;  %s23_s23 = ssub.s32 %s833_s12, %s913_s21 }
  0x11   : > { %s705_s26 = scalar_lea.hbm %s1147_s1, 4096 }
  0x12   : > { %p908_p11 = pnand %p652_p9, %p1149_p1  ;;  %p706_p12 = scmp.ne.s32.totalorder %s1147_s1, %s705_s26 }
  0x13   : > { %p712_p5 = scmp.lt.u32.totalorder %s705_s26, %s1147_s1 }
  0x14   : > { %p707_p13 = pneg %p908_p11 }
  0x16   : > { %p708_p0 = pnand %p707_p13, %p706_p12 }
  0x18   : > { %p709_p3 = pneg %p708_p0 }
  0x1a   : > { %p714_p7 = pnand %p712_p5, %p709_p3 }
  0x1c   : > { %717 = shalt.err (!%p714_p7)
}
  0x1d   : > { %s718_s3 = scalar_lea.vmem %s901_s19, 4096  ;;  %p726_p2 = scmp.lt.s32.totalorder %s901_s19, %s901_s19 }
  0x1e   : > { %p719_p9 = scmp.ne.s32.totalorder %s901_s19, %s718_s3  ;;  %p727_p6 = scmp.lt.s32.totalorder %s718_s3, %s718_s3 }
  0x20   : > { %p721_p10 = pnand %p719_p9, %p707_p13  ;;  %p728_p4 = por %p727_p6, %p726_p2 }
  0x22   : > { %p722_p1 = pneg %p721_p10 }
  0x24   : > { %p729_p8 = pnand %p728_p4, %p722_p1 }
  0x26   : > { %732 = shalt.err (!%p729_p8)
}
  0x27   : > { %s836_s4 = smov 128   ;;  %s837_s5 = smov 8  }
  0x28   : > { %655 = dma.hbm_to_vmem [thread:$0]  (!%p908_p11), %s1147_s1, 4096, %s901_s19, [#allocation6], %s836_s4, %s836_s4, %s837_s5  }
  0x29   : > { %p24_p2 = scmp.eq.s32.totalorder %s23_s23, 0  ;;  %p33_p1 = scmp.ne.s32.totalorder %s829_s11, %s825_s10 }
  0x2a   : > { %p34_p4 = scmp.eq.s32.totalorder %s833_s12, 0  ;;  %p665_p6 = scmp.lt.s32.totalorder %s833_s12, 2 }
  0x2b   : > { %s944_s8 = scalar_select %p24_p2, %s829_s11, %s26_s22  }
  0x2c   : > { %p35_p8 = por %p34_p4, %p33_p1  ;;  %p1156_p10 = scmp.eq.s32.totalorder %s878_s13, 1 }
  0x2d   : > { %s123_s18 = sand.u32 1, %s829_s11   ;;  %s576_s24 = sshll.u32 %s833_s12, 11 }
  0x2e   : > { %p948_p12 = por %p1156_p10, %p33_p1  ;;  %s563_s25 = sshll.u32 %s123_s18, 7 }
  0x2f   : > { %s957_s27 = scalar_lea.hbm %s1146_s0, %s576_s24  ;;  %s127_s19 = scalar_lea.vmem [#allocation2], %s563_s25 }
  0x30   : > { %s135_s22 = sshll.u32 %s127_s19, 4  ;;  %p959_p11 = pnand %p665_p6, %p35_p8  ;;  %s963_s22 = int_to_ptr.vmem [resolvable:$true] %s135_s22 }
  0x31   : > { %s965_s28 = scalar_lea.sflag [#allocation3], %s123_s18  ;;  %s733_s29 = scalar_lea.hbm %s957_s27, 2048 }
  0x32   : > { %p734_p13 = scmp.ne.s32.totalorder %s957_s27, %s733_s29  ;;  %p735_p0 = pneg %p959_p11 }
  0x33   : > { %s738_s4 = scalar_lea.hbm %s1146_s0, 4096  ;;  %p739_p7 = scmp.lt.u32.totalorder %s957_s27, %s1146_s0 }
  0x34   : > { %p736_p3 = pnand %p735_p0, %p734_p13  ;;  %p740_p9 = scmp.lt.u32.totalorder %s738_s4, %s733_s29 }
  0x35   : > { %p742_p1 = scmp.lt.u32.totalorder %s733_s29, %s957_s27 }
  0x36   : > { %p737_p5 = pneg %p736_p3  ;;  %p741_p2 = por %p740_p9, %p739_p7 }
  0x38   : > { %p743_p4 = por %p742_p1, %p741_p2 }
  0x3a   : > { %p744_p6 = pnand %p743_p4, %p737_p5 }
  0x3c   : > { %747 = shalt.err (!%p744_p6)
}
  0x3d   : > { %s748_s7 = scalar_lea.vmem %s963_s22, 2048  ;;  %s838_s18 = smov [#allocation2]  }
  0x3e   : > { %p749_p8 = scmp.ne.s32.totalorder %s963_s22, %s748_s7  ;;  %s753_s24 = sshll.u32 %s838_s18, 4  ;;  %s754_s24 = int_to_ptr.vmem [resolvable:$false] %s753_s24 }
  0x3f   : > { %s755_s25 = scalar_lea.vmem %s754_s24, 4096  ;;  %p756_p3 = scmp.lt.s32.totalorder %s963_s22, %s754_s24 }
  0x40   : > { %p751_p10 = pnand %p749_p8, %p735_p0  ;;  %p757_p7 = scmp.lt.s32.totalorder %s755_s25, %s748_s7 }
  0x42   : > { %p752_p13 = pneg %p751_p10  ;;  %p758_p9 = por %p757_p7, %p756_p3 }
  0x44   : > { %p759_p2 = pnand %p758_p9, %p752_p13 }
  0x46   : > { %762 = shalt.err (!%p759_p2)
}
  0x47   : > { %s839_s20 = smov 256   ;;  %s840_s26 = smov 16  }
  0x48   : > { %659 = dma.hbm_to_vmem [thread:$0]  (!%p959_p11), %s957_s27, 2048, %s963_s22, %s965_s28, %s839_s20, %s839_s20, %s840_s26  }
  0x49   : > { %p1159_p0 = scmp.ne.s32.totalorder %s1154_s17, 0 }
  0x4a   : > { %s996_s19 = sand.u32 (!%p1159_p0), 1, %s825_s10   ;;  %p1160_p5 = scmp.ne.s32.totalorder (!%p1159_p0), %s1152_s15, 0 }
  0x4b   : > { %147 = sbr.rel (%p1159_p0) target bundleno = 365 (0x16d), region = 28  ;;  %s568_s29 = sshll.u32 (!%p1159_p0), %s996_s19, 7 }
  0x4c   : > { %s150_s30 = scalar_lea.sflag (!%p1159_p0), [#allocation3], %s996_s19  ;;  %s1000_s3 = scalar_lea.vmem (!%p1159_p0), [#allocation2], %s568_s29 }
  0x52   : > { %808 = dma.done.wait (%p1160_p5), %s150_s30, 2048  }
  0x53   : > { %810 = vsyncadd (%p1160_p5), %s150_s30, 4294965248  ;;  %p1161_p11 = scmp.eq.s32.totalorder %s878_s13, 0 }
  0x55   : > { %812 = dma.done.wait (%p1161_p11), [#allocation6], 4096   ;;  %p1162_p1 = pmov %p1161_p11 }
  0x56   : > { %v339_v0 = vld [vmem:[#allocation5 + $0x80] sm:$0xff]  ;;  %v340_v1 = vld [vmem:[#allocation5 + $0x88] sm:$0xff]  ;;  %v341_v5 = vld [vmem:[#allocation5 + $0x90] sm:$0xff]  ;;  %vm371_vm0 = vcmask 1041409   ;;  %vm373_vm1 = vcmask 1042434   ;;  %vm375_vm2 = vcmask 1043459  }
  0x57   : > { %814 = vsyncadd (%p1162_p1), [#allocation6], 4294963200  ;;  %v323_v2 = vld [vmem:[#allocation5] sm:$0xff]  ;;  %v612_v3 = vpack.c.bf16 %v340_v1, %v339_v0  ;;  %v324_v4 = vld [vmem:[#allocation5 + $0x8] sm:$0xff]  ;;  %vm377_vm3 = vcmask 1044484   ;;  %vm379_vm4 = vcmask 1045509  }
  0x58   : > { %v342_v6 = vld [vmem:[#allocation5 + $0x98] sm:$0xff]  ;;  %v614_v7 = vpack.c.bf16 %v324_v4, %v323_v2  ;;  %v325_v9 = vld [vmem:[#allocation5 + $0x10] sm:$0xff]  ;;  %v343_v11 = vld [vmem:[#allocation5 + $0xa0] sm:$0xff]  ;;  %vm381_vm5 = vcmask 1046534   ;;  %vm383_vm6 = vcmask 1047559   ;;  %s570_s15 = sshll.u32 %s996_s19, 3 }
  0x59   : > { %v616_v8 = vpack.c.bf16 %v342_v6, %v341_v5  ;;  %v326_v10 = vld [vmem:[#allocation5 + $0x18] sm:$0xff]  ;;  %613 = vmatprep.subr.bf16.mxu0 %v612_v3  ;;  %v344_v12 = vld [vmem:[#allocation5 + $0xa8] sm:$0xff]  ;;  %v327_v13 = vld [vmem:[#allocation5 + $0x20] sm:$0xff]  ;;  %s572_s17 = sshll.u32 %s878_s13, 7  ;;  %s177_s27 = scalar_lea.vmem [#allocation7], %s570_s15 }
  0x5a   : > { %v328_v14 = vld [vmem:[#allocation5 + $0x28] sm:$0xff]  ;;  %615 = vmatpush3.bf16.msra.mxu0 %v614_v7  ;;  %v618_v15 = vpack.c.bf16 %v326_v10, %v325_v9  ;;  %v345_v16 = vld [vmem:[#allocation5 + $0xb0] sm:$0xff]  ;;  %v346_v17 = vld [vmem:[#allocation5 + $0xb8] sm:$0xff]  ;;  %v620_v19 = vpack.c.bf16 %v344_v12, %v343_v11  ;;  %s479_s22 = sshll.u32 %s177_s27, 4  ;;  %s1102_s4 = scalar_lea.hbm %s1148_s2, %s572_s17  ;;  %s1104_s22 = int_to_ptr.vmem [resolvable:$true] %s479_s22 }
  0x5b   : > { %v329_v18 = vld [vmem:[#allocation5 + $0x30] sm:$0xff]  ;;  %617 = vmatprep.subr.bf16.mxu0 %v616_v8  ;;  %v330_v20 = vld [vmem:[#allocation5 + $0x38] sm:$0xff]  ;;  %v347_v21 = vld [vmem:[#allocation5 + $0xc0] sm:$0xff]  ;;  %v622_v29 = vpack.c.bf16 %v328_v14, %v327_v13  ;;  %v624_v33 = vpack.c.bf16 %v346_v17, %v345_v16  ;;  %s466_s5 = scalar_lea.sflag [#allocation4], %s996_s19  ;;  %s763_s6 = scalar_lea.vmem %s1104_s22, 128 }
  0x5c   : > { %v348_v22 = vld [vmem:[#allocation5 + $0xc8] sm:$0xff]  ;;  %v1010_v23 = vld [vmem:[#allocation5 + $0x40] sm:$0xff]  ;;  %v1014_v25 = vld [vmem:[#allocation5 + $0xd0] sm:$0xff]  ;;  %v626_v34 = vpack.c.bf16 %v330_v20, %v329_v18  ;;  %p764_p4 = scmp.ne.s32.totalorder %s1104_s22, %s763_s6  ;;  %s841_s13 = smov [#allocation7]  }
  0x5d   : > { %v1012_v24 = vld [vmem:[#allocation5 + $0x48] sm:$0xff]  ;;  %v1016_v26 = vld [vmem:[#allocation5 + $0xd8] sm:$0xff]  ;;  %v1018_v27 = vld [vmem:[#allocation5 + $0x50] sm:$0xff]  ;;  %v628_v38 = vpack.c.bf16 %v348_v22, %v347_v21  ;;  %s767_s7 = sshll.u32 %s841_s13, 4  ;;  %s768_s7 = int_to_ptr.vmem [resolvable:$false] %s767_s7 }
  0x5e   : > { %v1020_v28 = vld [vmem:[#allocation5 + $0x58] sm:$0xff]  ;;  %619 = vmatpush3.bf16.msra.mxu0 %v618_v15  ;;  %v1022_v30 = vld [vmem:[#allocation5 + $0xe0] sm:$0xff]  ;;  %v1024_v31 = vld [vmem:[#allocation5 + $0xe8] sm:$0xff]  ;;  %v630_v39 = vpack.c.bf16 %v1012_v24, %v1010_v23  ;;  %v632_v40 = vpack.c.bf16 %v1016_v26, %v1014_v25  ;;  %p765_p6 = pnand %p764_p4, %p948_p12  ;;  %s769_s18 = scalar_lea.vmem %s768_s7, 256 }
  0x5f   : > { %v1026_v32 = vld [vmem:[#allocation5 + $0x60] sm:$0xff]  ;;  %621 = vmatprep.subr.bf16.mxu0 %v620_v19  ;;  %v1028_v35 = vld [vmem:[#allocation5 + $0x68] sm:$0xff]  ;;  %v1030_v36 = vld [vmem:[#allocation5 + $0xf0] sm:$0xff]  ;;  %v634_v41 = vpack.c.bf16 %v1020_v28, %v1018_v27  ;;  %v636_v45 = vpack.c.bf16 %v1024_v31, %v1022_v30  ;;  %p770_p10 = scmp.lt.s32.totalorder %s1104_s22, %s768_s7  ;;  %p771_p13 = scmp.lt.s32.totalorder %s769_s18, %s763_s6 }
  0x60   : > { %v1032_v37 = vld [vmem:[#allocation5 + $0xf8] sm:$0xff]  ;;  %v1040_v42 = vld [vmem:[#allocation5 + $0x70] sm:$0xff]  ;;  %v180_v44 = vld [vmem:[%s1000_s3 + $0x8] sm:$0xff]  ;;  %v638_v46 = vpack.c.bf16 %v1028_v35, %v1026_v32  ;;  %p766_p8 = pneg %p765_p6 }
  0x61   : > { %v1042_v43 = vld [vmem:[#allocation5 + $0x78] sm:$0xff]  ;;  %v640_v47 = vpack.c.bf16 %v1032_v37, %v1030_v36  ;;  %v184_v49 = vld [vmem:[%s1000_s3 + $0x28] sm:$0xff]  ;;  %v201_v51 = vrot.slane %v180_v44, 4  ;;  %p772_p3 = por %p771_p13, %p770_p10 }
  0x62   : > { %v182_v48 = vld [vmem:[%s1000_s3 + $0x18] sm:$0xff]  ;;  %623 = vmatpush3.bf16.msra.mxu0 %v622_v29  ;;  %v642_v52 = vpack.c.bf16 %v1042_v43, %v1040_v42  ;;  %v188_v53 = vld [vmem:[%s1000_s3 + $0x48] sm:$0xff]  ;;  %v225_v57 = vrot.slane %v184_v49, 4 }
  0x63   : > { %v186_v50 = vld [vmem:[%s1000_s3 + $0x38] sm:$0xff]  ;;  %v192_v55 = vld [vmem:[%s1000_s3 + $0x68] sm:$0xff]  ;;  %v213_v56 = vrot.slane %v182_v48, 4  ;;  %625 = vmatprep.subr.bf16.mxu0 %v624_v33  ;;  %v202_v60 = vadd.f32 %v201_v51, %v180_v44  ;;  %v249_v61 = vrot.slane %v188_v53, 4  ;;  %v179_v51 = vld [vmem:[%s1000_s3] sm:$0xff]  ;;  %p773_p7 = pnand %p772_p3, %p766_p8 }
  0x64   : > { %v190_v54 = vld [vmem:[%s1000_s3 + $0x58] sm:$0xff]  ;;  %v237_v58 = vrot.slane %v186_v50, 4  ;;  %v273_v63 = vrot.slane %v192_v55, 4  ;;  %v226_v1 = vadd.f32 %v225_v57, %v184_v49  ;;  %v181_v57 = vld [vmem:[%s1000_s3 + $0x10] sm:$0xff] }
  0x65   : > { %v194_v59 = vld [vmem:[%s1000_s3 + $0x78] sm:$0xff]  ;;  %v261_v62 = vrot.slane %v190_v54, 4  ;;  %v214_v0 = vadd.f32 %v213_v56, %v182_v48  ;;  %v203_v4 = vrot.slane %v202_v60, 2  ;;  %v250_v5 = vadd.f32 %v249_v61, %v188_v53 }
  0x66   : > { %v238_v2 = vadd.f32 %v237_v58, %v186_v50  ;;  %v285_v3 = vrot.slane %v194_v59, 4  ;;  %v274_v7 = vadd.f32 %v273_v63, %v192_v55  ;;  %627 = vmatpush3.bf16.msra.mxu0 %v626_v34  ;;  %v227_v9 = vrot.slane %v226_v1, 2  ;;  %v187_v63 = vld [vmem:[%s1000_s3 + $0x40] sm:$0xff] }
  0x67   : > { %v262_v6 = vadd.f32 %v261_v62, %v190_v54  ;;  %v215_v8 = vrot.slane %v214_v0, 2  ;;  %629 = vmatprep.subr.bf16.mxu0 %v628_v38  ;;  %v204_v12 = vadd.f32 %v203_v4, %v202_v60  ;;  %v251_v13 = vrot.slane %v250_v5, 2  ;;  %v185_v62 = vld [vmem:[%s1000_s3 + $0x30] sm:$0xff] }
  0x68   : > { %v239_v10 = vrot.slane %v238_v2, 2  ;;  %v286_v11 = vadd.f32 %v285_v3, %v194_v59  ;;  %v275_v15 = vrot.slane %v274_v7, 2  ;;  %v228_v17 = vadd.f32 %v227_v9, %v226_v1  ;;  %v189_v3 = vld [vmem:[%s1000_s3 + $0x50] sm:$0xff] }
  0x69   : > { %v263_v14 = vrot.slane %v262_v6, 2  ;;  %v216_v16 = vadd.f32 %v215_v8, %v214_v0  ;;  %v205_v20 = vrot.slane %v204_v12, 1  ;;  %v252_v21 = vadd.f32 %v251_v13, %v250_v5 }
  0x6a   : > { %v240_v18 = vadd.f32 %v239_v10, %v238_v2  ;;  %v287_v19 = vrot.slane %v286_v11, 2  ;;  %v276_v23 = vadd.f32 %v275_v15, %v274_v7  ;;  %631 = vmatpush3.bf16.msra.mxu0 %v630_v39  ;;  %v229_v25 = vrot.slane %v228_v17, 1 }
  0x6b   : > { %v264_v22 = vadd.f32 %v263_v14, %v262_v6  ;;  %v217_v24 = vrot.slane %v216_v16, 1  ;;  %633 = vmatprep.subr.bf16.mxu0 %v632_v40  ;;  %v206_v33 = vadd.f32 %v205_v20, %v204_v12  ;;  %v253_v34 = vrot.slane %v252_v21, 1  ;;  %v183_v40 = vld [vmem:[%s1000_s3 + $0x20] sm:$0xff] }
  0x6c   : > { %v241_v26 = vrot.slane %v240_v18, 1  ;;  %v288_v29 = vadd.f32 %v287_v19, %v286_v11  ;;  %v277_v44 = vrot.slane %v276_v23, 1  ;;  %v230_v49 = vadd.f32 %v229_v25, %v228_v17 }
  0x6d   : > { %v265_v38 = vrot.slane %v264_v22, 1  ;;  %v218_v48 = vadd.f32 %v217_v24, %v216_v16  ;;  %v254_v53 = vadd.f32 %v253_v34, %v252_v21  ;;  %v308_v56 = vmul.f32 0.125, %v206_v33  ;;  %v191_v16 = vld [vmem:[%s1000_s3 + $0x60] sm:$0xff] }
  0x6e   : > { %v242_v50 = vadd.f32 %v241_v26, %v240_v18  ;;  %v289_v39 = vrot.slane %v288_v29, 1  ;;  %v278_v55 = vadd.f32 %v277_v44, %v276_v23  ;;  %635 = vmatpush3.bf16.msra.mxu0 %v634_v41  ;;  %v312_v60 = vmul.f32 0.125, %v230_v49  ;;  %v193_v18 = vld [vmem:[%s1000_s3 + $0x70] sm:$0xff] }
  0x6f   : > { %v266_v54 = vadd.f32 %v265_v38, %v264_v22  ;;  %v310_v59 = vmul.f32 0.125, %v218_v48  ;;  %637 = vmatprep.subr.bf16.mxu0 %v636_v45  ;;  %v316_v0 = vmul.f32 0.125, %v254_v53  ;;  %v195_v4 = vrot.slane %v179_v51, 4 }
  0x70   : > { %v290_v58 = vadd.f32 %v289_v39, %v288_v29  ;;  %v314_v61 = vmul.f32 0.125, %v242_v50  ;;  %v320_v2 = vmul.f32 0.125, %v278_v55  ;;  %v207_v27 = vrot.slane %v181_v57, 4 }
  0x71   : > { %v318_v1 = vmul.f32 0.125, %v266_v54  ;;  %v385_v6 = vsel %vm371_vm0, %v310_v59, %v308_v56  ;;  %v219_v28 = vrot.slane %v183_v40, 4  ;;  %v196_v7 = vadd.f32 %v195_v4, %v179_v51 }
  0x72   : > { %v322_v5 = vmul.f32 0.125, %v290_v58  ;;  %v386_v41 = vsel %vm373_vm1, %v312_v60, %v385_v6  ;;  %v231_v8 = vrot.slane %v185_v62, 4  ;;  %v243_v9 = vrot.slane %v187_v63, 4  ;;  %639 = vmatpush3.bf16.msra.mxu0 %v638_v46 }
  0x73   : > { %v387_v30 = vsel %vm375_vm2, %v314_v61, %v386_v41  ;;  %v208_v31 = vadd.f32 %v207_v27, %v181_v57  ;;  %v220_v45 = vadd.f32 %v219_v28, %v183_v40  ;;  %v255_v10 = vrot.slane %v189_v3, 4  ;;  %641 = vmatprep.subr.bf16.mxu0 %v640_v47 }
  0x74   : > { %v388_v11 = vsel %vm377_vm3, %v316_v0, %v387_v30  ;;  %v197_v12 = vrot.slane %v196_v7, 2  ;;  %v232_v13 = vadd.f32 %v231_v8, %v185_v62  ;;  %v244_v14 = vadd.f32 %v243_v9, %v187_v63 }
  0x75   : > { %v389_v15 = vsel %vm379_vm4, %v318_v1, %v388_v11  ;;  %v209_v32 = vrot.slane %v208_v31, 2  ;;  %v221_v35 = vrot.slane %v220_v45, 2  ;;  %v256_v46 = vadd.f32 %v255_v10, %v189_v3 }
  0x76   : > { %v390_v17 = vsel %vm381_vm5, %v320_v2, %v389_v15  ;;  %v198_v19 = vadd.f32 %v197_v12, %v196_v7  ;;  %v233_v20 = vrot.slane %v232_v13, 2  ;;  %v245_v21 = vrot.slane %v244_v14, 2  ;;  %643 = vmatpush3.bf16.msra.mxu0 %v642_v52 }
  0x77   : > { %v391_v36 = vsel %vm383_vm6, %v322_v5, %v390_v17  ;;  %v210_v37 = vadd.f32 %v209_v32, %v208_v31  ;;  %v222_v47 = vadd.f32 %v221_v35, %v220_v45  ;;  %v257_v22 = vrot.slane %v256_v46, 2 }
  0x78   : > { %458 = vmatprep.mubr.f32.mxu0 %v391_v36  ;;  %v199_v23 = vrot.slane %v198_v19, 1  ;;  %v234_v24 = vadd.f32 %v233_v20, %v232_v13  ;;  %v246_v25 = vadd.f32 %v245_v21, %v244_v14  ;;  %v267_v26 = vrot.slane %v191_v16, 4 }
  0x79   : > { %v211_v29 = vrot.slane %v210_v37, 1  ;;  %v223_v33 = vrot.slane %v222_v47, 1  ;;  %v258_v34 = vadd.f32 %v257_v22, %v256_v46  ;;  %v279_v38 = vrot.slane %v193_v18, 4 }
  0x7a   : > { %v200_v44 = vadd.f32 %v199_v23, %v198_v19  ;;  %v235_v48 = vrot.slane %v234_v24, 1  ;;  %v247_v49 = vrot.slane %v246_v25, 1  ;;  %v268_v50 = vadd.f32 %v267_v26, %v191_v16 }
  0x7b   : > { %v212_v42 = vadd.f32 %v211_v29, %v210_v37  ;;  %v224_v43 = vadd.f32 %v223_v33, %v222_v47  ;;  %v259_v52 = vrot.slane %v258_v34, 1  ;;  %v280_v39 = vadd.f32 %v279_v38, %v193_v18 }
  0x7c   : > { %v236_v51 = vadd.f32 %v235_v48, %v234_v24  ;;  %v248_v53 = vadd.f32 %v247_v49, %v246_v25  ;;  %v269_v54 = vrot.slane %v268_v50, 2  ;;  %v307_v55 = vmul.f32 0.125, %v200_v44 }
  0x7d   : > { %v260_v56 = vadd.f32 %v259_v52, %v258_v34  ;;  %v281_v57 = vrot.slane %v280_v39, 2  ;;  %v309_v40 = vmul.f32 0.125, %v212_v42  ;;  %v311_v58 = vmul.f32 0.125, %v224_v43 }
  0x7e   : > { %v270_v59 = vadd.f32 %v269_v54, %v268_v50  ;;  %v313_v60 = vmul.f32 0.125, %v236_v51  ;;  %v315_v61 = vmul.f32 0.125, %v248_v53 }
  0x7f   : > { %v282_v62 = vadd.f32 %v281_v57, %v280_v39  ;;  %v317_v63 = vmul.f32 0.125, %v260_v56  ;;  %v372_v0 = vsel %vm371_vm0, %v309_v40, %v307_v55 }
  0x80   : > { %v271_v1 = vrot.slane %v270_v59, 1  ;;  %v374_v2 = vsel %vm373_vm1, %v311_v58, %v372_v0 }
  0x81   : > { %v283_v3 = vrot.slane %v282_v62, 1  ;;  %v376_v4 = vsel %vm375_vm2, %v313_v60, %v374_v2 }
  0x82   : > { %v272_v5 = vadd.f32 %v271_v1, %v270_v59  ;;  %v378_v6 = vsel %vm377_vm3, %v315_v61, %v376_v4 }
  0x83   : > { %v284_v27 = vadd.f32 %v283_v3, %v282_v62  ;;  %v380_v28 = vsel %vm379_vm4, %v317_v63, %v378_v6 }
  0x84   : > { %v319_v41 = vmul.f32 0.125, %v272_v5 }
  0x85   : > { %v321_v7 = vmul.f32 0.125, %v284_v27 }
  0x86   : > { %v382_v8 = vsel %vm381_vm5, %v319_v41, %v380_v28 }
  0x87   : > { %v384_v9 = vsel %vm383_vm6, %v321_v7, %v382_v8 }
  0x88   : > { %459 = vmatmul.mubr.f32.vlgmr.msra.gmra.mrb[0].mxu0 %v384_v9 }
 0x15b   : > { %v609_v30 = vpop.f32.mrb[0].mxu0 }
 0x15c   : > { %v610_v31 = vpop.f32.mrb[1].mxu0 }
 0x15d   : > { %v611_v45 = vadd.f32 %v610_v31, %v609_v30 }
 0x15f   : > { %464 = vst [vmem:[%s177_s27] sm:$0xff] %v611_v45 }
 0x160   : > { %776 = shalt.err (!%p773_p7)
}
 0x161   : > { %s777_s24 = scalar_lea.hbm %s1102_s4, 128  ;;  %s781_s26 = scalar_lea.hbm %s1148_s2, 256 }
 0x162   : > { %p778_p9 = scmp.ne.s32.totalorder %s1102_s4, %s777_s24  ;;  %p782_p5 = scmp.lt.u32.totalorder %s1102_s4, %s1148_s2 }
 0x163   : > { %p783_p11 = scmp.lt.u32.totalorder %s781_s26, %s777_s24  ;;  %p785_p4 = scmp.lt.u32.totalorder %s777_s24, %s1102_s4 }
 0x164   : > { %p779_p2 = pnand %p778_p9, %p948_p12 }
 0x165   : > { %p784_p1 = por %p783_p11, %p782_p5 }
 0x166   : > { %p780_p0 = pneg %p779_p2 }
 0x167   : > { %p786_p6 = por %p785_p4, %p784_p1 }
 0x169   : > { %p787_p8 = pnand %p786_p6, %p780_p0 }
 0x16b   : > { %790 = shalt.err (!%p787_p8)
}
 0x16c   : > { %650 = dma.vmem_to_hbm [thread:$0]  (%p948_p12), %s1104_s22, 128, %s1102_s4, %s466_s5  }
 0x16d PF: > { %s491_s30 = sand.u32 1, %s821_s9   ;;  %p1163_p10 = scmp.ne.s32.totalorder %s1153_s16, 0 }
 0x16e   : > { %p1164_p13 = scmp.ge.s32.totalorder %s833_s12, 2  ;;  %s492_s3 = scalar_lea.sflag [#allocation4], %s491_s30 }
 0x170   : > { %p661_p3 = pnand %p1164_p13, %p1163_p10 }
 0x172   : > { %816 = dma.done.wait (!%p661_p3), %s492_s3, 128  }
 0x173   : > { %818 = vsyncadd (!%p661_p3), %s492_s3, 4294967168  ;;  %p16_p7 = scmp.ge.s32.totalorder %s913_s21, 4   ;;  %s1165_s9 = smov %s825_s10 }
 0x174   : > { %s1166_s10 = smov %s829_s11  ;;  %s1167_s11 = smov %s944_s8 }
 0x175   : > { %s1168_s12 = smov %s913_s21  ;;  %18 = sbr.rel (!%p16_p7) target bundleno = 6 (0x6), region = 77 }
 0x17c   :  { %497 = vsyncpa [#allocation3], 1 }
 0x17d   :  { %499 = vsyncpa [#allocation3 + $0x1], 1 }
 0x17e   :  { %500 = vsyncpa [#allocation6], 1 }
 0x17f   :  { %501 = vsyncpa [#allocation4], 1 }
 0x180   :  { %503 = vsyncpa [#allocation4 + $0x1], 1 }

</bundles_post_ra>
